<compile_context>
chip_gen: v7x
topology: tpu7x:2x2x1
jax: 0.10.0
libtpu: 0.0.40
codegen_flags: <defaults>
</compile_context>

<pallas_src>
import jax
import jax.numpy as jnp
from jax import lax
from jax.experimental import pallas as pl
from jax.experimental.pallas import tpu as pltpu


def _round_up(n, m):
    return (n + m - 1) // m * m


def _cdiv(a, b):
    return (a + b - 1) // b


# --------------------------------------------------------------------------- #
# Kernels
# --------------------------------------------------------------------------- #
def _gmapping_resident_kernel(x_ref, w_ref, b_ref, o_ref):
    """Whole weight stack resident in VMEM; one grid step per batch tile.

    x_ref: [bn, D] f32, w_ref: [L, D_in, D_out] bf16 (pre-transposed),
    b_ref: [L, D_out] f32, o_ref: [bn, D_out] f32."""
    x = x_ref[...].astype(jnp.float32)
    # PixelNorm: x * rsqrt(mean(x^2, -1) + 1e-8)
    h = x * lax.rsqrt(jnp.mean(x * x, axis=-1, keepdims=True) + 1e-8)
    bias = b_ref[...]                                   # [L, D] f32 (tiny)
    num_layers = w_ref.shape[0]
    for l in range(num_layers):                         # static, fully unrolled
        y = jnp.dot(h.astype(jnp.bfloat16), w_ref[l],
                    preferred_element_type=jnp.float32)  # MXU, f32 accum
        y = y + bias[l:l + 1, :]
        h = jnp.maximum(y, 0.2 * y)                     # leaky-ReLU(0.2)
    o_ref[...] = h.astype(o_ref.dtype)


def _gmapping_stream_kernel(x_ref, w_ref, b_ref, o_ref, h_ref):
    """Per-layer weight streaming: grid = (batch_tiles, L), layer innermost.

    x_ref: [bn, D] f32 (block index constant over l -> fetched once per tile),
    w_ref: [1, D_in, D_out] bf16 (layer l slab), b_ref: [L, D_out] f32 (whole,
    constant block), o_ref: [bn, D_out] f32, h_ref: [bn, D] f32 VMEM scratch."""
    l = pl.program_id(1)

    @pl.when(l == 0)
    def _():
        x = x_ref[...].astype(jnp.float32)
        h_ref[...] = x * lax.rsqrt(jnp.mean(x * x, axis=-1, keepdims=True) + 1e-8)

    y = jnp.dot(h_ref[...].astype(jnp.bfloat16), w_ref[0],
                preferred_element_type=jnp.float32)     # MXU, f32 accum
    y = y + b_ref[pl.ds(l, 1), :]                        # [1, D] broadcast row
    h = jnp.maximum(y, 0.2 * y)
    h_ref[...] = h

    @pl.when(l == pl.num_programs(1) - 1)
    def _():
        o_ref[...] = h.astype(o_ref.dtype)


# --------------------------------------------------------------------------- #
# pallas_call builders
# --------------------------------------------------------------------------- #
def _vmem_limit_from_estimate(est_bytes):
    # Explicit scoped-VMEM budget: estimate + headroom, clamped so it is safe
    # on every chip (v7x physical VMEM is 64 MiB, v5e default scoped is 16 MiB).
    return int(min(max(est_bytes + (4 << 20), 16 << 20), 48 << 20))


def _resident_weight_specs(L, d):
    """Single-buffer the constant-index weight/bias blocks when supported."""
    w_map = lambda i: (0, 0, 0)
    b_map = lambda i: (0, 0)
    if hasattr(pl, "Buffered"):
        try:
            return (pl.BlockSpec((L, d, d), w_map, pipeline_mode=pl.Buffered(1)),
                    pl.BlockSpec((L, d), b_map, pipeline_mode=pl.Buffered(1)),
                    1)
        except TypeError:
            pass  # this jax version's BlockSpec has no pipeline_mode kwarg
    return (pl.BlockSpec((L, d, d), w_map),
            pl.BlockSpec((L, d), b_map),
            2)


def _build_resident_call(n_pad, d, L, bn):
    w_spec, b_spec, w_bufs = _resident_weight_specs(L, d)
    est = (2 * bn * d * 4                 # x, double-buffered
           + w_bufs * L * d * d * 2       # bf16 weight stack
           + w_bufs * L * d * 4           # bias
           + 2 * bn * d * 4)              # out, double-buffered
    flops = 2 * n_pad * d * d * L
    bytes_accessed = n_pad * d * 4 + L * d * d * 2 + L * d * 4 + n_pad * d * 4
    return pl.pallas_call(
        _gmapping_resident_kernel,
        out_shape=jax.ShapeDtypeStruct((n_pad, d), jnp.float32),
        grid_spec=pltpu.PrefetchScalarGridSpec(
            num_scalar_prefetch=0,
            grid=(n_pad // bn,),
            in_specs=[pl.BlockSpec((bn, d), lambda i: (i, 0)), w_spec, b_spec],
            out_specs=pl.BlockSpec((bn, d), lambda i: (i, 0)),
        ),
        compiler_params=pltpu.CompilerParams(
            dimension_semantics=("parallel",),
            vmem_limit_bytes=_vmem_limit_from_estimate(est)),
        cost_estimate=pl.CostEstimate(
            flops=flops, transcendentals=n_pad, bytes_accessed=bytes_accessed),
    )


def _build_stream_call(n_pad, d, L, bn):
    n_tiles = n_pad // bn
    est = (2 * bn * d * 4                 # x, double-buffered
           + 2 * d * d * 2                # one bf16 layer slab, double-buffered
           + 2 * L * d * 4                # bias stack
           + 2 * bn * d * 4               # out, double-buffered
           + bn * d * 4)                  # h scratch
    flops = 2 * n_pad * d * d * L
    bytes_accessed = (n_pad * d * 4 + n_tiles * L * d * d * 2
                      + L * d * 4 + n_pad * d * 4)
    return pl.pallas_call(
        _gmapping_stream_kernel,
        out_shape=jax.ShapeDtypeStruct((n_pad, d), jnp.float32),
        grid_spec=pltpu.PrefetchScalarGridSpec(
            num_scalar_prefetch=0,
            grid=(n_tiles, L),
            in_specs=[pl.BlockSpec((bn, d), lambda i, l: (i, 0)),
                      pl.BlockSpec((1, d, d), lambda i, l: (l, 0, 0)),
                      pl.BlockSpec((L, d), lambda i, l: (0, 0))],
            out_specs=pl.BlockSpec((bn, d), lambda i, l: (i, 0)),
            scratch_shapes=[pltpu.VMEM((bn, d), jnp.float32)],
        ),
        compiler_params=pltpu.CompilerParams(
            dimension_semantics=("parallel", "arbitrary"),
            vmem_limit_bytes=_vmem_limit_from_estimate(est)),
        cost_estimate=pl.CostEstimate(
            flops=flops, transcendentals=n_pad, bytes_accessed=bytes_accessed),
    )


# --------------------------------------------------------------------------- #
# Wrapper
# --------------------------------------------------------------------------- #
def _choose_bn(N, block_n):
    """bn is a multiple of 16 (bf16 sublane pack), preferably 256 (MXU rows);
    large batches default to 1024-row tiles but are split so the batch grid
    has >= 2 steps (v7x megacore)."""
    n16 = _round_up(max(N, 1), 16)
    if block_n is not None:
        return min(_round_up(block_n, 16), n16)
    bn_cap = 1024
    if n16 >= 2 * bn_cap:
        return bn_cap
    if n16 > 512:
        return max(256, _round_up(_cdiv(n16, 2), 256))
    return n16 if n16 <= 128 else _round_up(n16, 128)


def gmapping_forward(x, w_stack, b_stack, dlatent_broadcast=None,
                     block_n=None, weight_mode="auto"):
    """x: [N, D] f32; w_stack: [L, D_out, D_in] effective runtime weights
    (PyTorch F.linear convention); b_stack: [L, D_out] effective runtime bias.
    weight_mode: 'auto' | 'stream' | 'resident'."""
    N, D_in = x.shape
    L, D_out, D_in_w = w_stack.shape
    # TODO(synk): non-uniform layer widths (latent != fmaps != dlatent) would
    # need per-layer shapes; StyleGAN default is uniform so we assert it.
    assert D_in == D_in_w and D_in == D_out, "kernel assumes uniform layer widths"
    d = D_out

    bn = _choose_bn(N, block_n)
    n_pad = _round_up(N, bn)
    x_p = x.astype(jnp.float32)
    if n_pad != N:
        x_p = jnp.pad(x_p, ((0, n_pad - N), (0, 0)))   # zero rows survive pixel-norm

    # One-time parameter glue: transpose to [L, D_in, D_out] (canonical MXU
    # matmul), bf16 weights halve HBM/VMEM traffic; accumulation stays f32.
    w_t = jnp.transpose(w_stack, (0, 2, 1)).astype(jnp.bfloat16)
    b = b_stack.astype(jnp.float32)

    n_tiles = n_pad // bn
    mode = weight_mode
    if mode == "auto":
        worst_resident_w_bytes = 2 * L * d * d * 2     # assume double-buffered
        mode = ("resident"
                if (n_tiles >= 4 and worst_resident_w_bytes <= (12 << 20))
                else "stream")

    if mode == "resident":
        out = _build_resident_call(n_pad, d, L, bn)(x_p, w_t, b)
    else:
        out = _build_stream_call(n_pad, d, L, bn)(x_p, w_t, b)

    out = out[:N]
    if dlatent_broadcast is not None:
        # x.unsqueeze(1).expand(-1, dlatent_broadcast, -1)  (plain-JAX glue)
        out = jnp.broadcast_to(out[:, None, :], (N, dlatent_broadcast, d))
    return out


# --------------------------------------------------------------------------- #
# Parameter init (equalized-lr semantics) + pure-JAX reference
# --------------------------------------------------------------------------- #
def init_gmapping_params(key, latent_size, mapping_fmaps, dlatent_size,
                         mapping_layers, lrmul=0.01, gain=jnp.sqrt(2.0)):
    """EqualizedLinear(use_wscale=True): raw ~ randn(out,in)/lrmul, runtime
    weight = raw * (he_std * lrmul) = randn(out,in) * gain / sqrt(fan_in);
    runtime bias = 0 * lrmul = 0."""
    assert latent_size == mapping_fmaps == dlatent_size
    D = mapping_fmaps
    ws, bs = [], []
    for layer_idx in range(mapping_layers):
        key, sub = jax.random.split(key)
        fan_in = latent_size if layer_idx == 0 else mapping_fmaps
        he_std = gain / jnp.sqrt(jnp.float32(fan_in))
        raw = jax.random.normal(sub, (D, D), jnp.float32) * (1.0 / lrmul)
        ws.append(raw * (he_std * lrmul))
        bs.append(jnp.zeros((D,), jnp.float32))
    return jnp.stack(ws, 0), jnp.stack(bs, 0)


def gmapping_reference(x, w_stack, b_stack, dlatent_broadcast=None):
    h = x * lax.rsqrt(jnp.mean(x * x, axis=-1, keepdims=True) + 1e-8)
    for l in range(w_stack.shape[0]):
        y = h @ w_stack[l].T + b_stack[l]
        h = jnp.where(y >= 0, y, 0.2 * y)
    if dlatent_broadcast is not None:
        h = jnp.broadcast_to(h[:, None, :],
                             (h.shape[0], dlatent_broadcast, h.shape[-1]))
    return h


if __name__ == "__main__":
    # Small shapes consistent with GMapping: latent == fmaps == dlatent, 4 layers.
    N = 20              # NOT a multiple of the tile -> exercises padding
    LATENT = 256
    LAYERS = 4
    BROADCAST = 6

    key = jax.random.PRNGKey(0)
    kx, kp, kb = jax.random.split(key, 3)
    x = jax.random.normal(kx, (N, LATENT), jnp.float32)
    w_stack, b_stack = init_gmapping_params(kp, LATENT, LATENT, LATENT, LAYERS)
    b_stack = b_stack + 0.05 * jax.random.normal(kb, b_stack.shape, jnp.float32)

    # Path 1: streaming layout, multiple batch tiles, dlatent_broadcast.
    out = gmapping_forward(x, w_stack, b_stack, dlatent_broadcast=BROADCAST,
                           block_n=16, weight_mode="stream")
    out = jax.block_until_ready(out)
    ref = gmapping_reference(x, w_stack, b_stack, dlatent_broadcast=BROADCAST)
    assert out.shape == (N, BROADCAST, LATENT)
    assert jnp.allclose(out, ref, atol=5e-2, rtol=5e-2), \
        float(jnp.max(jnp.abs(out - ref)))

    # Path 2: resident (whole weight stack in VMEM, single-buffered when
    # supported), multiple batch tiles, no broadcast.
    out2 = gmapping_forward(x, w_stack, b_stack, block_n=16,
                            weight_mode="resident")
    out2 = jax.block_until_ready(out2)
    ref2 = gmapping_reference(x, w_stack, b_stack)
    assert out2.shape == (N, LATENT)
    assert jnp.allclose(out2, ref2, atol=5e-2, rtol=5e-2), \
        float(jnp.max(jnp.abs(out2 - ref2)))

    # Path 3: default auto tiling / auto weight mode.
    out3 = jax.block_until_ready(gmapping_forward(x, w_stack, b_stack))
    assert out3.shape == (N, LATENT)
    assert jnp.allclose(out3, ref2, atol=5e-2, rtol=5e-2)

    print("KERNEL_OK")
</pallas_src>

<mosaic_0001>
module attributes {stable_mosaic.version = 11 : i64} {
  func.func @_gmapping_stream_kernel(%arg0: i32, %arg1: i32, %arg2: memref<16x256xf32, #tpu.memory_space<vmem>>, %arg3: memref<1x256x256xbf16, #tpu.memory_space<vmem>>, %arg4: memref<4x256xf32, #tpu.memory_space<vmem>>, %arg5: memref<16x256xf32, #tpu.memory_space<vmem>>, %arg6: memref<16x256xf32, #tpu.memory_space<vmem>>) attributes {dimension_semantics = [#tpu.dimension_semantics<parallel>, #tpu.dimension_semantics<arbitrary>], iteration_bounds = array<i64: 2, 4>, scalar_prefetch = 0 : i64, scratch_operands = 1 : i64, tpu.core_type = #tpu.core_type<tc>, window_params = [{transform_indices = @transform_0, window_bounds = array<i64: 16, 256>}, {transform_indices = @transform_1, window_bounds = array<i64: 1, 256, 256>}, {pipeline_mode = #tpu.pipeline_mode<synchronous>, transform_indices = @transform_2, window_bounds = array<i64: 4, 256>}, {transform_indices = @transform_3, window_bounds = array<i64: 16, 256>}]} {
    %c0_i32 = arith.constant 0 : i32
    %0 = arith.cmpi eq, %arg1, %c0_i32 : i32
    %1 = arith.extui %0 : i1 to i32
    %c0_i32_0 = arith.constant 0 : i32
    %2 = arith.cmpi ne, %1, %c0_i32_0 : i32
    scf.if %2 {
      %c0_10 = arith.constant 0 : index
      %c0_11 = arith.constant 0 : index
      %19 = vector.load %arg2[%c0_10, %c0_11] : memref<16x256xf32, #tpu.memory_space<vmem>>, vector<16x256xf32>
      %20 = arith.mulf %19, %19 : vector<16x256xf32>
      %cst_12 = arith.constant dense<0.000000e+00> : vector<16xf32>
      %21 = vector.multi_reduction <add>, %20, %cst_12 [1] : vector<16x256xf32> to vector<16xf32>
      %22 = vector.shape_cast %21 : vector<16xf32> to vector<16x1xf32>
      %cst_13 = arith.constant 2.560000e+02 : f32
      %23 = vector.broadcast %cst_13 : f32 to vector<16x1xf32>
      %24 = arith.divf %22, %23 : vector<16x1xf32>
      %cst_14 = arith.constant 9.99999993E-9 : f32
      %25 = vector.broadcast %cst_14 : f32 to vector<16x1xf32>
      %26 = arith.addf %24, %25 : vector<16x1xf32>
      %27 = math.rsqrt %26 : vector<16x1xf32>
      %28 = vector.broadcast %27 : vector<16x1xf32> to vector<16x256xf32>
      %29 = arith.mulf %19, %28 : vector<16x256xf32>
      %c0_15 = arith.constant 0 : index
      %c0_16 = arith.constant 0 : index
      %30 = vector.load %arg6[%c0_15, %c0_16] : memref<16x256xf32, #tpu.memory_space<vmem>>, vector<16x256xf32>
      tpu.vector_store %arg6[%c0_15, %c0_16], %29 {strides = array<i32>} : memref<16x256xf32, #tpu.memory_space<vmem>>, vector<16x256xf32>,
    } else {
    }
    %c0 = arith.constant 0 : index
    %c0_1 = arith.constant 0 : index
    %3 = vector.load %arg6[%c0, %c0_1] : memref<16x256xf32, #tpu.memory_space<vmem>>, vector<16x256xf32>
    %4 = arith.truncf %3 : vector<16x256xf32> to vector<16x256xbf16>
    %c0_2 = arith.constant 0 : index
    %c0_3 = arith.constant 0 : index
    %c0_4 = arith.constant 0 : index
    %5 = vector.load %arg3[%c0_2, %c0_3, %c0_4] : memref<1x256x256xbf16, #tpu.memory_space<vmem>>, vector<1x256x256xbf16>
    %6 = vector.shape_cast %5 : vector<1x256x256xbf16> to vector<256x256xbf16>
    %cst = arith.constant dense<0.000000e+00> : vector<16x256xf32>
    %7 = tpu.matmul %4, %6, %cst {dimension_numbers = #tpu.dot_dimension_numbers<[1], [0], [0], [1], [0, 0, 1, 1], [], []>} : vector<16x256xbf16>, vector<256x256xbf16>, vector<16x256xf32> -> vector<16x256xf32>
    %8 = arith.index_cast %arg1 : i32 to index
    %c0_5 = arith.constant 0 : index
    %9 = vector.load %arg4[%8, %c0_5] : memref<4x256xf32, #tpu.memory_space<vmem>>, vector<1x256xf32>
    %10 = vector.broadcast %9 : vector<1x256xf32> to vector<16x256xf32>
    %11 = arith.addf %7, %10 : vector<16x256xf32>
    %cst_6 = arith.constant 2.000000e-01 : f32
    %12 = vector.broadcast %cst_6 : f32 to vector<16x256xf32>
    %13 = arith.mulf %12, %11 : vector<16x256xf32>
    %14 = arith.maximumf %11, %13 : vector<16x256xf32>
    %c0_7 = arith.constant 0 : index
    %c0_8 = arith.constant 0 : index
    %15 = vector.load %arg6[%c0_7, %c0_8] : memref<16x256xf32, #tpu.memory_space<vmem>>, vector<16x256xf32>
    tpu.vector_store %arg6[%c0_7, %c0_8], %14 {strides = array<i32>} : memref<16x256xf32, #tpu.memory_space<vmem>>, vector<16x256xf32>,
    %c3_i32 = arith.constant 3 : i32
    %16 = arith.cmpi eq, %arg1, %c3_i32 : i32
    %17 = arith.extui %16 : i1 to i32
    %c0_i32_9 = arith.constant 0 : i32
    %18 = arith.cmpi ne, %17, %c0_i32_9 : i32
    scf.if %18 {
      %c0_10 = arith.constant 0 : index
      %c0_11 = arith.constant 0 : index
      %19 = vector.load %arg5[%c0_10, %c0_11] : memref<16x256xf32, #tpu.memory_space<vmem>>, vector<16x256xf32>
      tpu.vector_store %arg5[%c0_10, %c0_11], %14 {strides = array<i32>} : memref<16x256xf32, #tpu.memory_space<vmem>>, vector<16x256xf32>,
    } else {
    }
    return
  }
  func.func @transform_0(%arg0: i32, %arg1: i32) -> (i32, i32) {
    %c0_i32 = arith.constant 0 : i32
    %c0_i32_0 = arith.constant 0 : i32
    return %arg0, %c0_i32 : i32, i32
  }
  func.func @transform_1(%arg0: i32, %arg1: i32) -> (i32, i32, i32) {
    %c0_i32 = arith.constant 0 : i32
    %c0_i32_0 = arith.constant 0 : i32
    %c0_i32_1 = arith.constant 0 : i32
    return %arg1, %c0_i32, %c0_i32_0 : i32, i32, i32
  }
  func.func @transform_2(%arg0: i32, %arg1: i32) -> (i32, i32) {
    %c0_i32 = arith.constant 0 : i32
    %c0_i32_0 = arith.constant 0 : i32
    %c0_i32_1 = arith.constant 0 : i32
    return %c0_i32, %c0_i32_0 : i32, i32
  }
  func.func @transform_3(%arg0: i32, %arg1: i32) -> (i32, i32) {
    %c0_i32 = arith.constant 0 : i32
    %c0_i32_0 = arith.constant 0 : i32
    return %arg0, %c0_i32 : i32, i32
  }
}

</mosaic_0001>

<bundles_post_ra>
// kernel: tpu_custom_call.1
= control target key start
LH: loop header
LB: loop body
LE: loop exit
PB: predicated region body
PF: predicated region fallthrough
CT: control target
= control target key end

     0   :  { %s1584_s0 = inlined_call_operand.hbm [shape: f32[32,256], index: 0, kind: input, shape index: {}]   ;;  %s1585_s1 = inlined_call_operand.hbm [shape: bf16[4,256,256], index: 1, kind: input, shape index: {}]   ;;  %s1586_s2 = inlined_call_operand.hbm [shape: f32[4,256], index: 2, kind: input, shape index: {}]   ;;  %s1587_s3 = inlined_call_operand.hbm [shape: f32[32,256], index: 3, kind: output, shape index: {}]  }
   0x1   :  { %1599 = sst [smem:[#allocation17_spill]] %s1584_s0 }
   0x2   :  { %1600 = sst [smem:[#allocation18_spill]] %s1586_s2 }
   0x3   :  { %1601 = sst [smem:[#allocation19_spill]] %s1587_s3 }
   0x4   :  { %8 = vsyncpa [#allocation4], 0 }
   0x5   :  { %10 = vsyncpa [#allocation4 + $0x1], 0 }
   0x6   :  { %11 = vsyncpa [#allocation7], 0 }
   0x7   :  { %13 = vsyncpa [#allocation7 + $0x1], 0 }
   0x8   :  { %14 = vsyncpa [#allocation5], 0 }
   0x9   :  { %16 = vsyncpa [#allocation5 + $0x1], 0  ;;  %s1195_s12 = smov 0   ;;  %s1197_s13 = smov 0  }
   0xa   :  { %s1199_s14 = smov 0   ;;  %s1201_s15 = smov 0  }
   0xb   :  { %s1203_s16 = smov 0   ;;  %s1205_s17 = smov 0  }
   0xc   :  { %s1207_s18 = smov 0   ;;  %s1209_s19 = smov 0  }
   0xd   :  { %s1211_s20 = smov 0   ;;  %s1213_s21 = smov 0  }
   0xe   :  { %s1215_s22 = smov 0  }
   0xf LB: > { %1602 = sst [smem:[#allocation14_spill]] %s1135_s15  ;;  %s1249_s23 = sadd.s32 4294967295, %s1163_s22   ;;  %s1163_s22 = sphi %s1215_s22, %s22_s22   ;;  %s1159_s21 = sphi %s1213_s21, %s1642_s21   ;;  %s1155_s20 = sphi %s1211_s20, %s1641_s20   ;;  %s1151_s19 = sphi %s1209_s19, %s1640_s19   ;;  %s1147_s18 = sphi %s1207_s18, %s1639_s18   ;;  %s1143_s17 = sphi %s1205_s17, %s1638_s17   ;;  %s1139_s16 = sphi %s1203_s16, %s1637_s16   ;;  %s1135_s15 = sphi %s1201_s15, %s1636_s15   ;;  %s1131_s14 = sphi %s1199_s14, %s1635_s14   ;;  %s1127_s13 = sphi %s1197_s13, %s1634_s13   ;;  %s1123_s12 = sphi %s1195_s12, %s1633_s12  }
  0x10   : > { %s705_s24 = sadd.s32 4294967294, %s1163_s22   ;;  %p48_p0 = scmp.ne.s32.totalorder %s1143_s17, %s1139_s16 }
  0x11   : > { %p49_p1 = scmp.eq.s32.totalorder %s1163_s22, 0  ;;  %p54_p2 = scmp.ne.s32.totalorder %s1139_s16, %s1135_s15 }
  0x12   : > { %p1590_p3 = scmp.eq.s32.totalorder %s1249_s23, 0  ;;  %p74_p5 = scmp.ne.s32.totalorder %s1131_s14, %s1127_s13 }
  0x13   : > { %p1263_p4 = por %p49_p1, %p48_p0  ;;  %p80_p7 = scmp.ne.s32.totalorder %s1127_s13, %s1123_s12 }
  0x14   : > { %p1274_p6 = por %p1590_p3, %p54_p2  ;;  %p1279_p8 = por %p74_p5, %p49_p1 }
  0x15   : > { %s1603_s27 = scalar_select %p1263_p4, 1, 0 }
  0x16   : > { %s1604_s28 = scalar_select %p1274_p6, 1, 0 }
  0x17   : > { %p125_p9 = scmp.eq.s32.totalorder %s1249_s23, 7  ;;  %p1286_p10 = por %p80_p7, %p1590_p3 }
  0x18   : > { %p131_p11 = scmp.eq.s32.totalorder %s705_s24, 7  ;;  %p706_p13 = scmp.ge.s32.totalorder %s1163_s22, 1 }
  0x19   : > { %s1606_s30 = scalar_select %p1286_p10, 1, 0 }
  0x1a   : > { %p1293_p12 = por %p125_p9, %p48_p0  ;;  %p1301_p1 = por %p131_p11, %p54_p2 }
  0x1b   : > { %p138_p5 = scmp.lt.s32.totalorder %s1163_s22, 9  ;;  %s1165_s7 = smov [#allocation8]  }
  0x1c   : > { %s1607_s4 = scalar_select %p1293_p12, 1, 0 }
  0x1d   : > { %s1608_s5 = scalar_select %p1301_p1, 1, 0 }
  0x1e   : > { %p1306_p6 = pnand %p706_p13, %p138_p5  ;;  %s151_s8 = sshll.u32 %s1165_s7, 4  ;;  %s152_s8 = int_to_ptr.vmem [resolvable:$true] %s151_s8 }
  0x1f   : > { %1609 = sst [smem:[#allocation15_spill]] %s1608_s5  ;;  %p1592_p7 = scmp.lt.s32.totalorder %s1163_s22, 8 }
  0x20   : > { %s1610_s6 = scalar_select %p1306_p6, 1, 0 }
  0x21   : > { %p779_p0 = pneg %p1306_p6  ;;  %s162_s9 = sand.u32 1, %s1143_s17  }
  0x22   : > { %p1324_p2 = pnand %p1592_p7, %p1279_p8  ;;  %s1613_s2 = sld [smem:[#allocation18_spill]] }
  0x23   : > { %p1316_p9 = pnand %p779_p0, %p1590_p3 }
  0x24   : > { %s1612_s11 = scalar_select %p1324_p2, 1, 0 }
  0x25   : > { %p947_p13 = pneg %p1316_p9 }
  0x28   : > { %s945_s7 = scalar_lea.hbm %s1613_s2, 128 }
  0x29   : > { %p946_p11 = scmp.ne.s32.totalorder %s1613_s2, %s945_s7  ;;  %p952_p3 = scmp.lt.u32.totalorder %s945_s7, %s1613_s2 }
  0x2b   : > { %p948_p5 = pnand %p947_p13, %p946_p11 }
  0x2d   : > { %p949_p0 = pneg %p948_p5 }
  0x2f   : > { %p954_p8 = pnand %p952_p3, %p949_p0 }
  0x31   : > { %957 = shalt.err (!%p954_p8)
}
  0x32   : > { %s958_s15 = scalar_lea.vmem %s152_s8, 128  ;;  %p966_p10 = scmp.lt.s32.totalorder %s152_s8, %s152_s8 }
  0x33   : > { %p959_p7 = scmp.ne.s32.totalorder %s152_s8, %s958_s15  ;;  %p967_p6 = scmp.lt.s32.totalorder %s958_s15, %s958_s15 }
  0x35   : > { %p961_p1 = pnand %p959_p7, %p947_p13  ;;  %p968_p2 = por %p967_p6, %p966_p10 }
  0x37   : > { %p962_p12 = pneg %p961_p1 }
  0x39   : > { %p969_p4 = pnand %p968_p2, %p962_p12 }
  0x3b   : > { %972 = shalt.err (!%p969_p4)
}
  0x3c   : > { %782 = dma.hbm_to_vmem [thread:$0]  (!%p1316_p9), %s1613_s2, 128, %s152_s8, [#allocation7]  }
  0x3d   : > { %s34_s5 = sadd.s32 1, %s1159_s21  ;;  %s709_s12 = sshll.u32 %s162_s9, 5 }
  0x3e   : > { %s764_s24 = sshll.u32 %s1159_s21, 9  ;;  %s1614_s0 = sld [smem:[#allocation17_spill]] }
  0x3f   : > { %s166_s10 = scalar_lea.vmem [#allocation3], %s709_s12  ;;  %p1615_p3 = scmp.ne.s32.totalorder %s1603_s27, 0 }
  0x40   : > { %s174_s3 = sshll.u32 %s166_s10, 4  ;;  %p1616_p4 = scmp.lt.s32.totalorder %s1163_s22, 8  ;;  %s1351_s3 = int_to_ptr.vmem [resolvable:$true] %s174_s3 }
  0x41   : > { %s1361_s25 = scalar_lea.sflag [#allocation4], %s162_s9 }
  0x42   : > { %p1357_p6 = pnand %p1616_p4, %p1615_p3 }
  0x44   : > { %s1349_s15 = scalar_lea.hbm %s1614_s0, %s764_s24  ;;  %p975_p12 = pneg %p1357_p6 }
  0x45   : > { %s973_s26 = scalar_lea.hbm %s1349_s15, 512  ;;  %s978_s27 = scalar_lea.hbm %s1614_s0, 1024 }
  0x46   : > { %p974_p10 = scmp.ne.s32.totalorder %s1349_s15, %s973_s26  ;;  %p979_p9 = scmp.lt.u32.totalorder %s1349_s15, %s1614_s0 }
  0x47   : > { %p980_p2 = scmp.lt.u32.totalorder %s978_s27, %s973_s26  ;;  %p982_p13 = scmp.lt.u32.totalorder %s973_s26, %s1349_s15 }
  0x48   : > { %p976_p1 = pnand %p975_p12, %p974_p10 }
  0x49   : > { %p981_p11 = por %p980_p2, %p979_p9 }
  0x4a   : > { %p977_p7 = pneg %p976_p1 }
  0x4b   : > { %p983_p5 = por %p982_p13, %p981_p11 }
  0x4d   : > { %p984_p0 = pnand %p983_p5, %p977_p7 }
  0x4f   : > { %987 = shalt.err (!%p984_p0)
}
  0x50   : > { %s988_s9 = scalar_lea.vmem %s1351_s3, 512  ;;  %s1166_s10 = smov [#allocation3]  }
  0x51   : > { %p989_p8 = scmp.ne.s32.totalorder %s1351_s3, %s988_s9  ;;  %s993_s12 = sshll.u32 %s1166_s10, 4  ;;  %s994_s12 = int_to_ptr.vmem [resolvable:$false] %s993_s12 }
  0x52   : > { %s995_s24 = scalar_lea.vmem %s994_s12, 1024  ;;  %p996_p10 = scmp.lt.s32.totalorder %s1351_s3, %s994_s12 }
  0x53   : > { %p991_p3 = pnand %p989_p8, %p975_p12  ;;  %p997_p1 = scmp.lt.s32.totalorder %s995_s24, %s988_s9 }
  0x55   : > { %p992_p4 = pneg %p991_p3  ;;  %p998_p9 = por %p997_p1, %p996_p10 }
  0x57   : > { %p999_p2 = pnand %p998_p9, %p992_p4 }
  0x59   : > { %1002 = shalt.err (!%p999_p2)
}
  0x5a   : > { %s1167_s26 = smov 256   ;;  %s1168_s27 = smov 16  }
  0x5b   : > { %786 = dma.hbm_to_vmem [thread:$0]  (!%p1357_p6), %s1349_s15, 512, %s1351_s3, %s1361_s25, %s1167_s26, %s1167_s26, %s1168_s27  }
  0x5c   : > { %s184_s7 = sand.u32 1, %s1163_s22   ;;  %s31_s29 = sadd.s32 1, %s1155_s20 }
  0x5d   : > { %p32_p12 = scmp.ge.s32.totalorder %s31_s29, 4  ;;  %s186_s9 = sand.u32 1, %s1131_s14  }
  0x5e   : > { %s713_s10 = sshll.u32 %s186_s9, 8  ;;  %s765_s12 = sshll.u32 %s1155_s20, 12 }
  0x5f   : > { %s1644_s29 = smov (%p32_p12, %s31_s29), 0  ;;  %s1646_s5 = smov (!%p32_p12, %s34_s5), %s1159_s21 }
  0x60   : > { %s64_s24 = ssub.s32 %s1155_s20, %s1644_s29  ;;  %p36_p6 = scmp.ge.s32.totalorder %s1646_s5, 2 }
  0x61   : > { %p65_p7 = scmp.eq.s32.totalorder %s64_s24, 0  ;;  %s1403_s8 = scalar_lea.hbm %s1585_s1, %s765_s12 }
  0x62   : > { %s188_s25 = scalar_lea.vmem [#allocation6], %s713_s10  ;;  %s1648_s5 = smov (%p36_p6, %s1646_s5), 0 }
  0x63   : > { %s195_s26 = sshll.u32 %s188_s25, 4  ;;  %1618 = sst [smem:[#allocation16_spill]] %s1648_s5  ;;  %s1414_s26 = int_to_ptr.vmem [resolvable:$true] %s195_s26 }
  0x64   : > { %s1619_s27 = sadd.s32 1, %s1131_s14  ;;  %s38_s0 = ssub.s32 %s1159_s21, %s1648_s5 }
  0x65   : > { %s1410_s9 = scalar_select %p65_p7, %s1131_s14, %s1619_s27  }
  0x66   : > { %p39_p11 = scmp.eq.s32.totalorder %s38_s0, 0  ;;  %s1620_s24 = sadd.s32 1, %s1143_s17 }
  0x67   : > { %s1421_s12 = scalar_lea.sflag [#allocation7], %s184_s7  ;;  %s1003_s15 = scalar_lea.hbm %s1403_s8, 4096 }
  0x68   : > { %s1419_s3 = scalar_select %p39_p11, %s1143_s17, %s1620_s24  }
  0x69   : > { %p1004_p13 = scmp.ne.s32.totalorder %s1403_s8, %s1003_s15  ;;  %p1621_p5 = scmp.ne.s32.totalorder %s1612_s11, 0 }
  0x6a   : > { %s1008_s27 = scalar_lea.hbm %s1585_s1, 16384  ;;  %p1009_p4 = scmp.lt.u32.totalorder %s1403_s8, %s1585_s1 }
  0x6b   : > { %p1005_p0 = pneg %p1621_p5  ;;  %p1010_p10 = scmp.lt.u32.totalorder %s1008_s27, %s1003_s15 }
  0x6c   : > { %p1012_p9 = scmp.lt.u32.totalorder %s1003_s15, %s1403_s8 }
  0x6d   : > { %p1006_p8 = pnand %p1005_p0, %p1004_p13  ;;  %p1011_p1 = por %p1010_p10, %p1009_p4 }
  0x6f   : > { %p1007_p3 = pneg %p1006_p8  ;;  %p1013_p2 = por %p1012_p9, %p1011_p1 }
  0x71   : > { %p1014_p12 = pnand %p1013_p2, %p1007_p3 }
  0x73   : > { %1017 = shalt.err (!%p1014_p12)
}
  0x74   : > { %s1018_s0 = scalar_lea.vmem %s1414_s26, 4096  ;;  %s1169_s7 = smov [#allocation6]  }
  0x75   : > { %p1019_p6 = scmp.ne.s32.totalorder %s1414_s26, %s1018_s0  ;;  %s1023_s24 = sshll.u32 %s1169_s7, 4  ;;  %s1024_s24 = int_to_ptr.vmem [resolvable:$false] %s1023_s24 }
  0x76   : > { %s1025_s2 = scalar_lea.vmem %s1024_s24, 8192  ;;  %p1026_p13 = scmp.lt.s32.totalorder %s1414_s26, %s1024_s24 }
  0x77   : > { %p1021_p7 = pnand %p1019_p6, %p1005_p0  ;;  %p1027_p8 = scmp.lt.s32.totalorder %s1025_s2, %s1018_s0 }
  0x79   : > { %p1022_p11 = pneg %p1021_p7  ;;  %p1028_p4 = por %p1027_p8, %p1026_p13 }
  0x7b   : > { %p1029_p10 = pnand %p1028_p4, %p1022_p11 }
  0x7d   : > { %1032 = shalt.err (!%p1029_p10)
}
  0x7e   : > { %s1170_s5 = smov 128   ;;  %s1171_s15 = smov 8  }
  0x7f   : > { %789 = dma.hbm_to_vmem [thread:$0]  (!%p1621_p5), %s1403_s8, 4096, %s1414_s26, %s1421_s12, %s1170_s5, %s1170_s5, %s1171_s15  }
  0x80   : > { %p1622_p0 = scmp.ne.s32.totalorder %s1610_s6, 0 }
  0x81   : > { %s1452_s10 = sand.u32 (!%p1622_p0), 1, %s1139_s16   ;;  %p1623_p3 = scmp.ne.s32.totalorder (!%p1622_p0), %s1604_s28, 0 }
  0x82   : > { %207 = sbr.rel (%p1622_p0) target bundleno = 630 (0x276), region = 32  ;;  %s717_s25 = sshll.u32 (!%p1622_p0), %s1452_s10, 5 }
  0x83   : > { %s210_s27 = scalar_lea.sflag (!%p1622_p0), [#allocation4], %s1452_s10  ;;  %s213_s0 = scalar_lea.vmem (!%p1622_p0), [#allocation3], %s717_s25 }
  0x89   : > { %1106 = dma.done.wait (%p1623_p3), %s210_s27, 512  }
  0x8a   : > { %1108 = vsyncadd (%p1623_p3), %s210_s27, 4294966784  ;;  %s218_s11 = sand.u32 1, %s1249_s23   ;;  %s220_s6 = sand.u32 1, %s1127_s13  }
  0x8b   : > { %s718_s8 = sshll.u32 %s220_s6, 8  ;;  %s219_s26 = scalar_lea.sflag [#allocation7], %s218_s11 }
  0x8c   : > { %s1462_s12 = scalar_lea.vmem [#allocation6], %s718_s8  ;;  %p1624_p5 = scmp.ne.s32.totalorder %s1606_s30, 0 }
  0x8e   : > { %1110 = dma.done.wait (%p1624_p5), %s219_s26, 4096  }
  0x8f   : > { %1112 = vsyncadd (%p1624_p5), %s219_s26, 4294963200  ;;  %p1625_p1 = scmp.eq.s32.totalorder %s1249_s23, 0 }
  0x91   : > { %1114 = dma.done.wait (%p1625_p1), [#allocation7], 128   ;;  %p1626_p9 = pmov %p1625_p1 }
  0x92   : > { %s1472_s28 = scalar_lea.vmem [#allocation9], %s717_s25  ;;  %p721_p2 = scmp.ne.s32.totalorder %s1147_s18, 0 }
  0x93   : > { %1116 = vsyncadd (%p1626_p9), [#allocation7], 4294967168  ;;  %v260_v0 = vld [vmem:[%s213_s0] sm:$0xff] (!%p721_p2)  ;;  %v261_v1 = vld [vmem:[%s213_s0 + $0x8] sm:$0xff] (!%p721_p2) }
  0x94   : > { %259 = sbr.rel (%p721_p2) target bundleno = 316 (0x13c), region = 48  ;;  %v262_v2 = vld [vmem:[%s213_s0 + $0x10] sm:$0xff] (!%p721_p2)  ;;  %v264_v3 = vmul.f32 (!%p721_p2), %v260_v0, %v260_v0  ;;  %v265_v4 = vmul.f32 (!%p721_p2), %v261_v1, %v261_v1  ;;  %v263_v5 = vld [vmem:[%s213_s0 + $0x18] sm:$0xff] (!%p721_p2) }
  0x95   : > { %v266_v6 = vmul.f32 (!%p721_p2), %v262_v2, %v262_v2  ;;  %v267_v7 = vmul.f32 (!%p721_p2), %v263_v5, %v263_v5 }
  0x96   : > { %v268_v8 = vadd.f32 (!%p721_p2), %v265_v4, %v264_v3 }
  0x97   : > { %v271_v9 = vadd.f32 (!%p721_p2), %v267_v7, %v266_v6 }
  0x98   : > { %269 = vadd.xlane.f32.xlu0 (!%p721_p2), %v268_v8 }
  0x9c   : > { %272 = vadd.xlane.f32.xlu0 %v271_v9 }
 0x125   : > { %v270_v10 = vpop.xlane.xlu0 %269 }
 0x126   : > { %v275_v11 = vmul.f32 0.00390625, %v270_v10 }
 0x128   : > { %v277_v12 = vadd.f32 1e-08, %v275_v11 }
 0x129   : > { %v273_v13 = vpop.xlane.xlu0 %272 }
 0x12a   : > { %893 = vrsqrt.f32 %v277_v12  ;;  %v276_v14 = vmul.f32 0.00390625, %v273_v13 }
 0x12c   : > { %v278_v15 = vadd.f32 1e-08, %v276_v14 }
 0x12e   : > { %895 = vrsqrt.f32 %v278_v15 }
 0x134   : > { %v894_v16 = vpop.eup %893 }
 0x135   : > { %v281_v17 = vmul.f32 %v894_v16, %v260_v0  ;;  %v282_v18 = vmul.f32 %v894_v16, %v261_v1 }
 0x137   : > { %285 = vst [vmem:[#allocation2] sm:$0xff] %v281_v17  ;;  %286 = vst [vmem:[#allocation2 + $0x8] sm:$0xff] %v282_v18 }
 0x138   : > { %v896_v19 = vpop.eup %895 }
 0x139   : > { %v283_v20 = vmul.f32 %v896_v19, %v262_v2  ;;  %v284_v21 = vmul.f32 %v896_v19, %v263_v5 }
 0x13b   : > { %287 = vst [vmem:[#allocation2 + $0x10] sm:$0xff] %v283_v20  ;;  %288 = vst [vmem:[#allocation2 + $0x18] sm:$0xff] %v284_v21 }
 0x13c PF: > { %v897_v22 = vld [vmem:[%s1462_s12 + $0x4] ss:$8 sps:$4 sm:$0xff]   ;;  %v899_v23 = vld [vmem:[%s1462_s12] ss:$8 sps:$4 sm:$0xff]   ;;  %v900_v24 = vld [vmem:[%s1462_s12 + $0x14] ss:$8 sps:$4 sm:$0xff]   ;;  %v337_v60 = vlaneseq }
 0x13d   : > { %507 = vmatprep.subr.bf16.mxu0 %v897_v22  ;;  %v902_v25 = vld [vmem:[%s1462_s12 + $0x10] ss:$8 sps:$4 sm:$0xff]   ;;  %v903_v26 = vld [vmem:[%s1462_s12 + $0x24] ss:$8 sps:$4 sm:$0xff]   ;;  %v905_v27 = vld [vmem:[%s1462_s12 + $0x20] ss:$8 sps:$4 sm:$0xff]  }
 0x13e   : > { %508 = vmatpush1.bf16.msra.mxu0 %v899_v23  ;;  %v906_v28 = vld [vmem:[%s1462_s12 + $0x34] ss:$8 sps:$4 sm:$0xff]   ;;  %v908_v29 = vld [vmem:[%s1462_s12 + $0x30] ss:$8 sps:$4 sm:$0xff]   ;;  %v909_v30 = vld [vmem:[%s1462_s12 + $0x44] ss:$8 sps:$4 sm:$0xff]  }
 0x13f   : > { %509 = vmatprep.subr.bf16.mxu0 %v900_v24  ;;  %v911_v31 = vld [vmem:[%s1462_s12 + $0x40] ss:$8 sps:$4 sm:$0xff]   ;;  %v912_v32 = vld [vmem:[%s1462_s12 + $0x54] ss:$8 sps:$4 sm:$0xff]   ;;  %v914_v33 = vld [vmem:[%s1462_s12 + $0x50] ss:$8 sps:$4 sm:$0xff]  }
 0x140   : > { %v915_v34 = vld [vmem:[%s1462_s12 + $0x64] ss:$8 sps:$4 sm:$0xff]   ;;  %v917_v38 = vld [vmem:[%s1462_s12 + $0x60] ss:$8 sps:$4 sm:$0xff]   ;;  %v918_v39 = vld [vmem:[%s1462_s12 + $0x74] ss:$8 sps:$4 sm:$0xff]  }
 0x141   : > { %v290_v35 = vld [vmem:[#allocation2 + $0x8] sm:$0xff]  ;;  %v920_v40 = vld [vmem:[%s1462_s12 + $0x70] ss:$8 sps:$4 sm:$0xff]   ;;  %v924_v43 = vld [vmem:[%s1462_s12 + $0x94] ss:$8 sps:$4 sm:$0xff]   ;;  %s327_s23 = sshra.s32 %s1147_s18, 2 }
 0x142   : > { %510 = vmatpush1.bf16.msra.mxu0 %v902_v25  ;;  %v292_v36 = vld [vmem:[#allocation2 + $0x18] sm:$0xff]  ;;  %v921_v41 = vld [vmem:[%s1462_s12 + $0x84] ss:$8 sps:$4 sm:$0xff]   ;;  %v923_v42 = vld [vmem:[%s1462_s12 + $0x80] ss:$8 sps:$4 sm:$0xff]   ;;  %s330_s30 = sand.u32 3, %s1147_s18 }
 0x143   : > { %511 = vmatprep.subr.bf16.mxu0 %v903_v26  ;;  %v294_v37 = vpack.c.bf16 %v292_v36, %v290_v35  ;;  %v926_v44 = vld [vmem:[%s1462_s12 + $0x90] ss:$8 sps:$4 sm:$0xff]   ;;  %v927_v45 = vld [vmem:[%s1462_s12 + $0xa4] ss:$8 sps:$4 sm:$0xff]   ;;  %v929_v46 = vld [vmem:[%s1462_s12 + $0xa0] ss:$8 sps:$4 sm:$0xff]  }
 0x144   : > { %v930_v47 = vld [vmem:[%s1462_s12 + $0xb4] ss:$8 sps:$4 sm:$0xff]   ;;  %v932_v48 = vld [vmem:[%s1462_s12 + $0xb0] ss:$8 sps:$4 sm:$0xff]   ;;  %v933_v49 = vld [vmem:[%s1462_s12 + $0xc4] ss:$8 sps:$4 sm:$0xff]  }
 0x145   : > { %539 = vmatprep.mubr.bf16.mxu0 %v294_v37  ;;  %v935_v50 = vld [vmem:[%s1462_s12 + $0xc0] ss:$8 sps:$4 sm:$0xff]   ;;  %v936_v51 = vld [vmem:[%s1462_s12 + $0xd4] ss:$8 sps:$4 sm:$0xff]   ;;  %v938_v52 = vld [vmem:[%s1462_s12 + $0xd0] ss:$8 sps:$4 sm:$0xff]  }
 0x146   : > { %512 = vmatpush1.bf16.msra.mxu0 %v905_v27  ;;  %v939_v53 = vld [vmem:[%s1462_s12 + $0xe4] ss:$8 sps:$4 sm:$0xff]   ;;  %v941_v54 = vld [vmem:[%s1462_s12 + $0xe0] ss:$8 sps:$4 sm:$0xff]   ;;  %v942_v55 = vld [vmem:[%s1462_s12 + $0xf4] ss:$8 sps:$4 sm:$0xff]  }
 0x147   : > { %513 = vmatprep.subr.bf16.mxu0 %v906_v28  ;;  %v944_v56 = vld [vmem:[%s1462_s12 + $0xf0] ss:$8 sps:$4 sm:$0xff]   ;;  %v289_v57 = vld [vmem:[#allocation2] sm:$0xff]  ;;  %s766_s7 = sshll.u32 %s327_s23, 3  ;;  %v338_v61 = vshrl.u32 %v337_v60, 7  ;;  %p756_p12 = scmp.ne.s32.totalorder %s1147_s18, 3 }
 0x148   : > { %v291_v58 = vld [vmem:[#allocation2 + $0x10] sm:$0xff]  ;;  %s333_s24 = sadd.s32 %s766_s7, %s330_s30 }
 0x149   : > { %v293_v59 = vpack.c.bf16 %v291_v58, %v289_v57  ;;  %v339_v62 = vsub.s32 0, %v338_v61  ;;  %s334_s2 = scalar_lea.vmem [#allocation8], %s333_s24  ;;  %v343_v0 = vsub.s32 1, %v338_v61 }
 0x14a   : > { %514 = vmatpush1.bf16.msra.mxu0 %v908_v29  ;;  %v335_v63 = vld [vmem:[%s334_s2] ss:$4 sm:$0x3] }
 0x14b   : > { %515 = vmatprep.subr.bf16.mxu0 %v909_v30  ;;  %v340_v1 = vrot.slane %v335_v63, %v339_v62  ;;  %v344_v2 = vrot.slane %v335_v63, %v343_v0 }
 0x14e   : > { %516 = vmatpush1.bf16.msra.mxu0 %v911_v31 }
 0x14f   : > { %517 = vmatprep.subr.bf16.mxu0 %v912_v32 }
 0x152   : > { %518 = vmatpush1.bf16.msra.mxu0 %v914_v33 }
 0x153   : > { %519 = vmatprep.subr.bf16.mxu0 %v915_v34 }
 0x156   : > { %520 = vmatpush1.bf16.msra.mxu0 %v917_v38 }
 0x157   : > { %521 = vmatprep.subr.bf16.mxu0 %v918_v39 }
 0x15a   : > { %522 = vmatpush1.bf16.msra.mxu0 %v920_v40 }
 0x15b   : > { %523 = vmatprep.subr.bf16.mxu0 %v921_v41 }
 0x15e   : > { %524 = vmatpush1.bf16.msra.mxu0 %v923_v42 }
 0x15f   : > { %525 = vmatprep.subr.bf16.mxu0 %v924_v43 }
 0x162   : > { %526 = vmatpush1.bf16.msra.mxu0 %v926_v44 }
 0x163   : > { %527 = vmatprep.subr.bf16.mxu0 %v927_v45 }
 0x166   : > { %528 = vmatpush1.bf16.msra.mxu0 %v929_v46 }
 0x167   : > { %529 = vmatprep.subr.bf16.mxu0 %v930_v47 }
 0x16a   : > { %530 = vmatpush1.bf16.msra.mxu0 %v932_v48 }
 0x16b   : > { %531 = vmatprep.subr.bf16.mxu0 %v933_v49 }
 0x16e   : > { %532 = vmatpush1.bf16.msra.mxu0 %v935_v50 }
 0x16f   : > { %533 = vmatprep.subr.bf16.mxu0 %v936_v51 }
 0x172   : > { %534 = vmatpush1.bf16.msra.mxu0 %v938_v52 }
 0x173   : > { %535 = vmatprep.subr.bf16.mxu0 %v939_v53 }
 0x176   : > { %536 = vmatpush1.bf16.msra.mxu0 %v941_v54 }
 0x177   : > { %537 = vmatprep.subr.bf16.mxu0 %v942_v55 }
 0x17a   : > { %538 = vmatpush1.bf16.msra.mxu0 %v944_v56 }
 0x17d   : > { %540 = vmatmul.mubr.bf16.vlgmr.msra.gmra.mrb[0].mxu0 %v293_v59 }
 0x250   : > { %v541_v3 = vpop.f32.mrb[0].mxu0 }
 0x251   : > { %v542_v4 = vadd.f32 %v541_v3, %v340_v1  ;;  %v543_v5 = vpop.f32.mrb[1].mxu0 }
 0x252   : > { %v544_v6 = vadd.f32 %v543_v5, %v344_v2  ;;  %v545_v7 = vpop.f32.mrb[2].mxu0 }
 0x253   : > { %v550_v8 = vmul.f32 0.2, %v542_v4  ;;  %v546_v9 = vadd.f32 %v545_v7, %v340_v1  ;;  %v547_v10 = vpop.f32.mrb[3].mxu0 }
 0x254   : > { %v551_v11 = vmul.f32 0.2, %v544_v6  ;;  %v548_v12 = vadd.f32 %v547_v10, %v344_v2  ;;  %565 = sbr.rel (%p756_p12) target bundleno = 603 (0x25b), region = 52 }
 0x255   : > { %v554_v13 = vmax.f32 %v542_v4, %v550_v8  ;;  %v552_v14 = vmul.f32 0.2, %v546_v9 }
 0x256   : > { %v555_v15 = vmax.f32 %v544_v6, %v551_v11  ;;  %v553_v16 = vmul.f32 0.2, %v548_v12 }
 0x257   : > { %558 = vst [vmem:[#allocation2] sm:$0xff] %v554_v13  ;;  %v556_v17 = vmax.f32 %v546_v9, %v552_v14  ;;  %566 = vst [vmem:[%s1472_s28] sm:$0xff] (!%p756_p12), %v554_v13 }
 0x258   : > { %559 = vst [vmem:[#allocation2 + $0x8] sm:$0xff] %v555_v15  ;;  %v557_v18 = vmax.f32 %v548_v12, %v553_v16  ;;  %567 = vst [vmem:[%s1472_s28 + $0x8] sm:$0xff] (!%p756_p12), %v555_v15 }
 0x259   : > { %560 = vst [vmem:[#allocation2 + $0x10] sm:$0xff] %v556_v17  ;;  %568 = vst [vmem:[%s1472_s28 + $0x10] sm:$0xff] (!%p756_p12), %v556_v17 }
 0x25a   : > { %561 = vst [vmem:[#allocation2 + $0x18] sm:$0xff] %v557_v18  ;;  %569 = vst [vmem:[%s1472_s28 + $0x18] sm:$0xff] (!%p756_p12), %v557_v18 }
 0x25b PF: > { %s768_s5 = sshll.u32 %s1151_s19, 9  ;;  %s1627_s27 = sld [smem:[#allocation19_spill]] }
 0x25c   : > { %s585_s18 = sshll.u32 %s1472_s28, 4  ;;  %s571_s11 = scalar_lea.sflag [#allocation5], %s1452_s10  ;;  %s1521_s18 = int_to_ptr.vmem [resolvable:$true] %s585_s18 }
 0x25d   : > { %s1033_s6 = scalar_lea.vmem %s1521_s18, 512  ;;  %p1628_p7 = scmp.ne.s32.totalorder %s1607_s4, 0 }
 0x25e   : > { %p1034_p6 = scmp.ne.s32.totalorder %s1521_s18, %s1033_s6  ;;  %s1172_s8 = smov [#allocation9]  }
 0x25f   : > { %s1037_s26 = sshll.u32 %s1172_s8, 4  ;;  %s1038_s26 = int_to_ptr.vmem [resolvable:$false] %s1037_s26 }
 0x260   : > { %p1035_p11 = pnand %p1034_p6, %p1628_p7  ;;  %s1039_s19 = scalar_lea.vmem %s1038_s26, 1024 }
 0x261   : > { %s1518_s0 = scalar_lea.hbm %s1627_s27, %s768_s5  ;;  %p1040_p8 = scmp.lt.s32.totalorder %s1521_s18, %s1038_s26 }
 0x262   : > { %p1036_p13 = pneg %p1035_p11  ;;  %p1041_p4 = scmp.lt.s32.totalorder %s1039_s19, %s1033_s6 }
 0x264   : > { %p1042_p10 = por %p1041_p4, %p1040_p8 }
 0x266   : > { %p1043_p0 = pnand %p1042_p10, %p1036_p13 }
 0x268   : > { %1046 = shalt.err (!%p1043_p0)
}
 0x269   : > { %s1047_s12 = scalar_lea.hbm %s1518_s0, 512  ;;  %s1051_s30 = scalar_lea.hbm %s1627_s27, 1024 }
 0x26a   : > { %p1048_p3 = scmp.ne.s32.totalorder %s1518_s0, %s1047_s12  ;;  %p1052_p9 = scmp.lt.u32.totalorder %s1518_s0, %s1627_s27 }
 0x26b   : > { %p1053_p2 = scmp.lt.u32.totalorder %s1051_s30, %s1047_s12  ;;  %p1055_p6 = scmp.lt.u32.totalorder %s1047_s12, %s1518_s0 }
 0x26c   : > { %p1049_p5 = pnand %p1048_p3, %p1628_p7 }
 0x26d   : > { %p1054_p12 = por %p1053_p2, %p1052_p9 }
 0x26e   : > { %p1050_p1 = pneg %p1049_p5 }
 0x26f   : > { %p1056_p11 = por %p1055_p6, %p1054_p12 }
 0x271   : > { %p1057_p13 = pnand %p1056_p11, %p1050_p1 }
 0x273   : > { %1060 = shalt.err (!%p1057_p13)
}
 0x274   : > { %s1173_s2 = smov 256   ;;  %s1174_s5 = smov 16  }
 0x275   : > { %777 = dma.vmem_to_hbm [thread:$0]  (%p1628_p7), %s1521_s18, 512, %s1518_s0, %s571_s11, %s1173_s2, %s1173_s2, %s1174_s5  }
 0x276 PF: > { %s1629_s15 = sld [smem:[#allocation14_spill]]  ;;  %s1630_s25 = sld [smem:[#allocation15_spill]] }
 0x277   : > { %p797_p8 = scmp.ge.s32.totalorder %s1163_s22, 2 }
 0x27c   : > { %s600_s6 = sand.u32 1, %s1629_s15   ;;  %p1631_p4 = scmp.ne.s32.totalorder %s1630_s25, 0 }
 0x27d   : > { %s601_s8 = scalar_lea.sflag [#allocation5], %s600_s6 }
 0x27e   : > { %p791_p10 = pnand %p797_p8, %p1631_p4 }
 0x280   : > { %1118 = dma.done.wait (!%p791_p10), %s601_s8, 512  }
 0x281   : > { %1120 = vsyncadd (!%p791_p10), %s601_s8, 4294966784  ;;  %s22_s22 = sadd.s32 1, %s1163_s22   ;;  %s1632_s4 = sld [smem:[#allocation16_spill]] }
 0x282   : > { %p19_p0 = scmp.ge.s32.totalorder %s22_s22, 10   ;;  %s1633_s12 = smov %s1127_s13 }
 0x283   : > { %s1634_s13 = smov %s1131_s14  ;;  %s1635_s14 = smov %s1410_s9 }
 0x284   : > { %s1636_s15 = smov %s1139_s16  ;;  %s1637_s16 = smov %s1143_s17 }
 0x285   : > { %s1638_s17 = smov %s1419_s3  ;;  %s1639_s18 = smov %s1155_s20 }
 0x286   : > { %s1640_s19 = smov %s1159_s21  ;;  %s1641_s20 = smov %s1644_s29 }
 0x287   : > { %s1642_s21 = smov %s1632_s4  ;;  %21 = sbr.rel (!%p19_p0) target bundleno = 15 (0xf), region = 103 }
 0x28e   :  { %606 = vsyncpa [#allocation4], 1 }
 0x28f   :  { %608 = vsyncpa [#allocation4 + $0x1], 1 }
 0x290   :  { %609 = vsyncpa [#allocation7], 1 }
 0x291   :  { %611 = vsyncpa [#allocation7 + $0x1], 1 }
 0x292   :  { %612 = vsyncpa [#allocation5], 1 }
 0x293   :  { %614 = vsyncpa [#allocation5 + $0x1], 1 }

</bundles_post_ra>
